<compile_context>
chip_gen: v6e
topology: v6e:2x2x1
jax: 0.10.0
libtpu: 0.0.40
codegen_flags: <defaults>
</compile_context>

<pallas_src>
import functools

import jax
import jax.numpy as jnp
from jax.experimental import pallas as pl
from jax.experimental.pallas import tpu as pltpu

_LANES = 128  # common padded feature width: every matmul operand is lane-dense


def _round_up(n, m):
    return ((n + m - 1) // m) * m


def _pad2(a, rows, cols):
    return jnp.pad(a, ((0, rows - a.shape[0]), (0, cols - a.shape[1])))


@functools.partial(jax.jit, static_argnames=("num_quantiles",))
def iqn_forward(x, q_tau, l_tau, params, *, num_quantiles):
    C = _LANES
    f32 = jnp.float32
    bf16 = jnp.bfloat16

    B, OBS = x.shape
    H0 = params["w0"].shape[1]
    H1 = params["w1"].shape[1]
    H = params["w2"].shape[1]          # encoder output == head hidden size
    P = params["wq"].shape[0]          # quantile embedding size
    A = params["wo"].shape[1]          # action shape
    NQ = num_quantiles
    NQB = NQ * B
    R = 2 * NQB                        # q-branch rows first, then logit rows

    # Enforced size guards: this small-model kernel keeps every feature dim in
    # a single 128-lane tile (larger configs would need a real grid).
    for d in (OBS, H0, H1, H, P, A, B):
        assert d <= C, f"feature dim {d} > {C}: add a grid for production sizes"

    # ---- fused f32 constants / activations buffer (one DMA) -----------------
    X_OFF = 0
    TAU_OFF = _round_up(B, 8)
    COEFF_OFF = TAU_OFF + R
    REP_OFF = COEFF_OFF + 8
    BIAS_OFF = REP_OFF + R
    C_ROWS = BIAS_OFF + 8

    # DI-engine sorts the logit-branch quantiles along dim 0 before use.
    l_tau_sorted = jnp.sort(l_tau, axis=0)
    tau = jnp.concatenate([q_tau, l_tau_sorted], axis=0)                  # (R,1)

    coeff = (jnp.pi * jnp.arange(1, P + 1, dtype=f32)).reshape(1, P)      # pi*(1..P)

    # x.repeat(NQ,1) expressed as a {0,1} row-selection matrix (precomputed).
    rep = (jnp.arange(R)[:, None] % B == jnp.arange(B)[None, :]).astype(f32)  # (R,B)

    biases = jnp.concatenate(
        [_pad2(params[k].reshape(1, -1), 1, C)
         for k in ("b0", "b1", "b2", "bq", "bh", "bo")], axis=0)          # (6,C)

    cbuf = jnp.concatenate([
        _pad2(x.astype(f32), TAU_OFF - X_OFF, C),      # obs, zero-padded lanes
        _pad2(tau.astype(f32), R, C),                  # tau in lane 0
        _pad2(coeff, REP_OFF - COEFF_OFF, C),          # cos coefficients
        _pad2(rep, R, C),                              # selection matrix
        _pad2(biases, C_ROWS - BIAS_OFF, C),           # 6 bias rows (f32)
    ], axis=0)                                         # (C_ROWS, 128) f32

    # ---- fused bf16 weight buffer (one DMA): six zero-padded 128x128 blocks -
    wbuf = jnp.concatenate(
        [_pad2(params[k], C, C) for k in ("w0", "w1", "w2", "wq", "wh", "wo")],
        axis=0).astype(bf16)                           # (6*128, 128) bf16

    def kernel(wbuf_ref, cbuf_ref, out_ref):
        def w(k):                       # k-th zero-padded (128,128) bf16 weight
            return wbuf_ref[k * C:(k + 1) * C, :]

        def b(i):                       # i-th bias row, (1,128) f32
            return cbuf_ref[BIAS_OFF + i:BIAS_OFF + i + 1, :]

        # FCEncoder: 3 x (Linear + ReLU).  bf16 MXU operands, f32 accumulation;
        # all elementwise work stays in f32 (v5e-safe).
        h = cbuf_ref[X_OFF:X_OFF + B, :]                                  # (B,128)
        for k in range(3):
            h = jnp.maximum(
                jnp.dot(h.astype(bf16), w(k), preferred_element_type=f32) + b(k),
                0.0)

        # QuantileHead: both tau branches fused into one stacked (R, .) pass.
        tau_c = cbuf_ref[TAU_OFF:TAU_OFF + R, 0:1]                        # (R,1)
        coeff_c = cbuf_ref[COEFF_OFF:COEFF_OFF + 1, :]                    # (1,128)
        emb = jnp.cos(coeff_c * tau_c)                                    # (R,128) EUP
        qn = jnp.maximum(
            jnp.dot(emb.astype(bf16), w(3), preferred_element_type=f32) + b(3),
            0.0)                                                          # (R,128)

        # x.repeat(NQ,1) for both branches via one tiny selection matmul.
        rep_c = cbuf_ref[REP_OFF:REP_OFF + R, 0:B]                        # (R,B)
        xr = jnp.dot(rep_c.astype(bf16), h.astype(bf16),
                     preferred_element_type=f32)                          # (R,128)

        z = xr * qn                                                       # f32
        z = jnp.maximum(
            jnp.dot(z.astype(bf16), w(4), preferred_element_type=f32) + b(4),
            0.0)
        out = jnp.dot(z.astype(bf16), w(5), preferred_element_type=f32) + b(5)

        # Single full-tile, lane-dense output store.
        out_ref[...] = out

    flops = 2 * (B * OBS * H0 + B * H0 * H1 + B * H1 * H     # encoder
                 + R * P * H                                  # iqn_fc
                 + R * B * H                                  # repeat-as-matmul
                 + R * H * H + R * H * A)                     # Q-net
    cost = pl.CostEstimate(
        flops=int(flops),
        transcendentals=int(R * P),
        bytes_accessed=int(wbuf.size * 2 + cbuf.size * 4 + R * C * 4))

    vmem_spec = pl.BlockSpec(memory_space=pltpu.MemorySpace.VMEM)
    out_pad = pl.pallas_call(
        kernel,
        out_shape=jax.ShapeDtypeStruct((R, C), jnp.float32),
        in_specs=[vmem_spec, vmem_spec],
        out_specs=vmem_spec,
        cost_estimate=cost,
    )(wbuf, cbuf)

    # q/logit split, un-padding and the quantile mean are tiny XLA ops.
    q = out_pad[:NQB, :A].reshape(NQ, B, A)
    logit = out_pad[NQB:, :A].reshape(NQ, B, A).mean(0)
    return {"logit": logit, "q": q, "quantiles": q_tau}


def _ref_forward(x, q_tau, l_tau, p, num_quantiles, bf16_matmul=False):
    """Pure-JAX reference. bf16_matmul=True mirrors the kernel's MXU dtypes."""
    f32 = jnp.float32
    if bf16_matmul:
        def dot(a, b):
            return jnp.dot(a.astype(jnp.bfloat16), b.astype(jnp.bfloat16),
                           preferred_element_type=f32)
    else:
        def dot(a, b):
            return jnp.dot(a, b, preferred_element_type=f32)

    l_tau = jnp.sort(l_tau, axis=0)          # DI-engine sorts logit quantiles
    h = jax.nn.relu(dot(x, p["w0"]) + p["b0"])
    h = jax.nn.relu(dot(h, p["w1"]) + p["b1"])
    h = jax.nn.relu(dot(h, p["w2"]) + p["b2"])
    if bf16_matmul:
        # kernel realizes x.repeat via a bf16 selection matmul -> rows = bf16(h)
        h_src = h.astype(jnp.bfloat16).astype(f32)
    else:
        h_src = h

    B = x.shape[0]
    P = p["wq"].shape[0]
    xr = jnp.tile(h_src, (num_quantiles, 1))
    coeff = jnp.pi * jnp.arange(1, P + 1, dtype=f32)

    def branch(tau):
        emb = jnp.cos(coeff[None, :] * tau)
        qn = jax.nn.relu(dot(emb, p["wq"]) + p["bq"])
        z = xr * qn
        z = jax.nn.relu(dot(z, p["wh"]) + p["bh"])
        return dot(z, p["wo"]) + p["bo"]

    q = branch(q_tau).reshape(num_quantiles, B, -1)
    logit = branch(l_tau).reshape(num_quantiles, B, -1).mean(0)
    return {"logit": logit, "q": q, "quantiles": q_tau}


def _init_params(key, obs, hidden_list, head_hidden, action, quant_emb):
    ks = jax.random.split(key, 9)

    def lin(kw, fan_in, fan_out):
        scale = 1.0 / jnp.sqrt(jnp.float32(fan_in))
        return jax.random.uniform(kw, (fan_in, fan_out), jnp.float32, -scale, scale)

    h0, h1, h2 = hidden_list
    return {
        "w0": lin(ks[0], obs, h0), "b0": jnp.zeros((1, h0), jnp.float32),
        "w1": lin(ks[1], h0, h1),  "b1": jnp.zeros((1, h1), jnp.float32),
        "w2": lin(ks[2], h1, h2),  "b2": jnp.zeros((1, h2), jnp.float32),
        # iqn_fc: Linear(quantile_embedding_size, head_hidden)
        "wq": lin(ks[3], quant_emb, head_hidden),
        "bq": jax.random.uniform(ks[4], (1, head_hidden), jnp.float32, -0.05, 0.05),
        # Q-net: Linear(H,H)+ReLU, Linear(H,A)
        "wh": lin(ks[5], head_hidden, head_hidden),
        "bh": jax.random.uniform(ks[6], (1, head_hidden), jnp.float32, -0.05, 0.05),
        "wo": lin(ks[7], head_hidden, action),
        "bo": jax.random.uniform(ks[8], (1, action), jnp.float32, -0.05, 0.05),
    }


if __name__ == "__main__":
    # small, forward-consistent shapes
    B = 2                       # batch
    OBS = 16                    # obs_shape (int -> FCEncoder)
    HIDDEN = [32, 32, 32]       # encoder_hidden_size_list
    HEAD_H = HIDDEN[-1]         # head_hidden_size
    ACTION = 6                  # action_shape
    NQ = 8                      # num_quantiles
    QEMB = 64                   # quantile_embedding_size

    key = jax.random.PRNGKey(0)
    k_x, k_q, k_l, k_p = jax.random.split(key, 4)

    x = jax.random.normal(k_x, (B, OBS), jnp.float32)
    # the torch module samples these uniformly at forward time; sampled
    # deterministically here (quantiles output == q_tau, shape (NQ*B, 1)).
    q_tau = jax.random.uniform(k_q, (NQ * B, 1), jnp.float32)
    l_tau = jax.random.uniform(k_l, (NQ * B, 1), jnp.float32)

    params = _init_params(k_p, OBS, HIDDEN, HEAD_H, ACTION, QEMB)

    out = iqn_forward(x, q_tau, l_tau, params, num_quantiles=NQ)
    jax.block_until_ready(out)

    ref_mixed = _ref_forward(x, q_tau, l_tau, params, NQ, bf16_matmul=True)
    ref_f32 = _ref_forward(x, q_tau, l_tau, params, NQ, bf16_matmul=False)

    assert out["logit"].shape == (B, ACTION)
    assert out["q"].shape == (NQ, B, ACTION)
    assert out["quantiles"].shape == (NQ * B, 1)
    # tight check vs. a reference mirroring the kernel's bf16 matmul operands
    assert jnp.allclose(out["q"], ref_mixed["q"], atol=5e-3, rtol=5e-3)
    assert jnp.allclose(out["logit"], ref_mixed["logit"], atol=5e-3, rtol=5e-3)
    # loose check vs. the pure-f32 semantics of the torch module
    assert jnp.allclose(out["q"], ref_f32["q"], atol=8e-2, rtol=8e-2)
    assert jnp.allclose(out["logit"], ref_f32["logit"], atol=8e-2, rtol=8e-2)

    print("KERNEL_OK")
</pallas_src>

<mosaic_0001>
module attributes {stable_mosaic.version = 11 : i64} {
  func.func @kernel(%arg0: memref<768x128xbf16, #tpu.memory_space<vmem>>, %arg1: memref<88x128xf32, #tpu.memory_space<vmem>>, %arg2: memref<32x128xf32, #tpu.memory_space<vmem>>) attributes {dimension_semantics = [], scalar_prefetch = 0 : i64, scratch_operands = 0 : i64, tpu.core_type = #tpu.core_type<tc>} {
    %c0 = arith.constant 0 : index
    %c0_0 = arith.constant 0 : index
    %0 = vector.load %arg1[%c0, %c0_0] : memref<88x128xf32, #tpu.memory_space<vmem>>, vector<2x128xf32>
    %1 = arith.truncf %0 : vector<2x128xf32> to vector<2x128xbf16>
    %c0_1 = arith.constant 0 : index
    %c0_2 = arith.constant 0 : index
    %2 = vector.load %arg0[%c0_1, %c0_2] : memref<768x128xbf16, #tpu.memory_space<vmem>>, vector<128x128xbf16>
    %cst = arith.constant dense<0.000000e+00> : vector<2x128xf32>
    %3 = tpu.matmul %1, %2, %cst {dimension_numbers = #tpu.dot_dimension_numbers<[1], [0], [0], [1], [0, 0, 1, 1], [], []>} : vector<2x128xbf16>, vector<128x128xbf16>, vector<2x128xf32> -> vector<2x128xf32>
    %c80 = arith.constant 80 : index
    %c0_3 = arith.constant 0 : index
    %4 = vector.load %arg1[%c80, %c0_3] : memref<88x128xf32, #tpu.memory_space<vmem>>, vector<1x128xf32>
    %5 = vector.broadcast %4 : vector<1x128xf32> to vector<2x128xf32>
    %6 = arith.addf %3, %5 : vector<2x128xf32>
    %cst_4 = arith.constant 0.000000e+00 : f32
    %7 = vector.broadcast %cst_4 : f32 to vector<2x128xf32>
    %8 = arith.maximumf %6, %7 : vector<2x128xf32>
    %9 = arith.truncf %8 : vector<2x128xf32> to vector<2x128xbf16>
    %c128 = arith.constant 128 : index
    %c0_5 = arith.constant 0 : index
    %10 = vector.load %arg0[%c128, %c0_5] : memref<768x128xbf16, #tpu.memory_space<vmem>>, vector<128x128xbf16>
    %cst_6 = arith.constant dense<0.000000e+00> : vector<2x128xf32>
    %11 = tpu.matmul %9, %10, %cst_6 {dimension_numbers = #tpu.dot_dimension_numbers<[1], [0], [0], [1], [0, 0, 1, 1], [], []>} : vector<2x128xbf16>, vector<128x128xbf16>, vector<2x128xf32> -> vector<2x128xf32>
    %c81 = arith.constant 81 : index
    %c0_7 = arith.constant 0 : index
    %12 = vector.load %arg1[%c81, %c0_7] : memref<88x128xf32, #tpu.memory_space<vmem>>, vector<1x128xf32>
    %13 = vector.broadcast %12 : vector<1x128xf32> to vector<2x128xf32>
    %14 = arith.addf %11, %13 : vector<2x128xf32>
    %cst_8 = arith.constant 0.000000e+00 : f32
    %15 = vector.broadcast %cst_8 : f32 to vector<2x128xf32>
    %16 = arith.maximumf %14, %15 : vector<2x128xf32>
    %17 = arith.truncf %16 : vector<2x128xf32> to vector<2x128xbf16>
    %c256 = arith.constant 256 : index
    %c0_9 = arith.constant 0 : index
    %18 = vector.load %arg0[%c256, %c0_9] : memref<768x128xbf16, #tpu.memory_space<vmem>>, vector<128x128xbf16>
    %cst_10 = arith.constant dense<0.000000e+00> : vector<2x128xf32>
    %19 = tpu.matmul %17, %18, %cst_10 {dimension_numbers = #tpu.dot_dimension_numbers<[1], [0], [0], [1], [0, 0, 1, 1], [], []>} : vector<2x128xbf16>, vector<128x128xbf16>, vector<2x128xf32> -> vector<2x128xf32>
    %c82 = arith.constant 82 : index
    %c0_11 = arith.constant 0 : index
    %20 = vector.load %arg1[%c82, %c0_11] : memref<88x128xf32, #tpu.memory_space<vmem>>, vector<1x128xf32>
    %21 = vector.broadcast %20 : vector<1x128xf32> to vector<2x128xf32>
    %22 = arith.addf %19, %21 : vector<2x128xf32>
    %cst_12 = arith.constant 0.000000e+00 : f32
    %23 = vector.broadcast %cst_12 : f32 to vector<2x128xf32>
    %24 = arith.maximumf %22, %23 : vector<2x128xf32>
    %c8 = arith.constant 8 : index
    %c0_13 = arith.constant 0 : index
    %25 = vector.load %arg1[%c8, %c0_13] : memref<88x128xf32, #tpu.memory_space<vmem>>, vector<32x1xf32>
    %c40 = arith.constant 40 : index
    %c0_14 = arith.constant 0 : index
    %26 = vector.load %arg1[%c40, %c0_14] : memref<88x128xf32, #tpu.memory_space<vmem>>, vector<1x128xf32>
    %27 = vector.broadcast %26 : vector<1x128xf32> to vector<32x128xf32>
    %28 = vector.broadcast %25 : vector<32x1xf32> to vector<32x128xf32>
    %29 = arith.mulf %27, %28 : vector<32x128xf32>
    %30 = math.cos %29 : vector<32x128xf32>
    %31 = arith.truncf %30 : vector<32x128xf32> to vector<32x128xbf16>
    %c384 = arith.constant 384 : index
    %c0_15 = arith.constant 0 : index
    %32 = vector.load %arg0[%c384, %c0_15] : memref<768x128xbf16, #tpu.memory_space<vmem>>, vector<128x128xbf16>
    %cst_16 = arith.constant dense<0.000000e+00> : vector<32x128xf32>
    %33 = tpu.matmul %31, %32, %cst_16 {dimension_numbers = #tpu.dot_dimension_numbers<[1], [0], [0], [1], [0, 0, 1, 1], [], []>} : vector<32x128xbf16>, vector<128x128xbf16>, vector<32x128xf32> -> vector<32x128xf32>
    %c83 = arith.constant 83 : index
    %c0_17 = arith.constant 0 : index
    %34 = vector.load %arg1[%c83, %c0_17] : memref<88x128xf32, #tpu.memory_space<vmem>>, vector<1x128xf32>
    %35 = vector.broadcast %34 : vector<1x128xf32> to vector<32x128xf32>
    %36 = arith.addf %33, %35 : vector<32x128xf32>
    %cst_18 = arith.constant 0.000000e+00 : f32
    %37 = vector.broadcast %cst_18 : f32 to vector<32x128xf32>
    %38 = arith.maximumf %36, %37 : vector<32x128xf32>
    %c48 = arith.constant 48 : index
    %c0_19 = arith.constant 0 : index
    %39 = vector.load %arg1[%c48, %c0_19] : memref<88x128xf32, #tpu.memory_space<vmem>>, vector<32x2xf32>
    %40 = arith.truncf %39 : vector<32x2xf32> to vector<32x2xbf16>
    %41 = arith.truncf %24 : vector<2x128xf32> to vector<2x128xbf16>
    %cst_20 = arith.constant dense<0.000000e+00> : vector<32x128xf32>
    %42 = tpu.matmul %40, %41, %cst_20 {dimension_numbers = #tpu.dot_dimension_numbers<[1], [0], [0], [1], [0, 0, 1, 1], [], []>} : vector<32x2xbf16>, vector<2x128xbf16>, vector<32x128xf32> -> vector<32x128xf32>
    %43 = arith.mulf %42, %38 : vector<32x128xf32>
    %44 = arith.truncf %43 : vector<32x128xf32> to vector<32x128xbf16>
    %c512 = arith.constant 512 : index
    %c0_21 = arith.constant 0 : index
    %45 = vector.load %arg0[%c512, %c0_21] : memref<768x128xbf16, #tpu.memory_space<vmem>>, vector<128x128xbf16>
    %cst_22 = arith.constant dense<0.000000e+00> : vector<32x128xf32>
    %46 = tpu.matmul %44, %45, %cst_22 {dimension_numbers = #tpu.dot_dimension_numbers<[1], [0], [0], [1], [0, 0, 1, 1], [], []>} : vector<32x128xbf16>, vector<128x128xbf16>, vector<32x128xf32> -> vector<32x128xf32>
    %c84 = arith.constant 84 : index
    %c0_23 = arith.constant 0 : index
    %47 = vector.load %arg1[%c84, %c0_23] : memref<88x128xf32, #tpu.memory_space<vmem>>, vector<1x128xf32>
    %48 = vector.broadcast %47 : vector<1x128xf32> to vector<32x128xf32>
    %49 = arith.addf %46, %48 : vector<32x128xf32>
    %cst_24 = arith.constant 0.000000e+00 : f32
    %50 = vector.broadcast %cst_24 : f32 to vector<32x128xf32>
    %51 = arith.maximumf %49, %50 : vector<32x128xf32>
    %52 = arith.truncf %51 : vector<32x128xf32> to vector<32x128xbf16>
    %c640 = arith.constant 640 : index
    %c0_25 = arith.constant 0 : index
    %53 = vector.load %arg0[%c640, %c0_25] : memref<768x128xbf16, #tpu.memory_space<vmem>>, vector<128x128xbf16>
    %cst_26 = arith.constant dense<0.000000e+00> : vector<32x128xf32>
    %54 = tpu.matmul %52, %53, %cst_26 {dimension_numbers = #tpu.dot_dimension_numbers<[1], [0], [0], [1], [0, 0, 1, 1], [], []>} : vector<32x128xbf16>, vector<128x128xbf16>, vector<32x128xf32> -> vector<32x128xf32>
    %c85 = arith.constant 85 : index
    %c0_27 = arith.constant 0 : index
    %55 = vector.load %arg1[%c85, %c0_27] : memref<88x128xf32, #tpu.memory_space<vmem>>, vector<1x128xf32>
    %56 = vector.broadcast %55 : vector<1x128xf32> to vector<32x128xf32>
    %57 = arith.addf %54, %56 : vector<32x128xf32>
    %c0_28 = arith.constant 0 : index
    %c0_29 = arith.constant 0 : index
    %58 = vector.load %arg2[%c0_28, %c0_29] : memref<32x128xf32, #tpu.memory_space<vmem>>, vector<32x128xf32>
    tpu.vector_store %arg2[%c0_28, %c0_29], %57 {strides = array<i32>} : memref<32x128xf32, #tpu.memory_space<vmem>>, vector<32x128xf32>,
    return
  }
}

</mosaic_0001>

<bundles_post_ra>
// kernel: iqn_forward.1
= control target key start
LH: loop header
LB: loop body
LE: loop exit
PB: predicated region body
PF: predicated region fallthrough
CT: control target
= control target key end

     0   :  { %v1589_v0 = vmov 0.0   ;;  %vm1590_vm0 = vmmov 0   ;;  %v1591_v21 = vmov 0   ;;  %s2159_s0 = inlined_call_operand.vmem [shape: bf16[768,128], index: 0, kind: input, shape index: {}]   ;;  %s2160_s1 = inlined_call_operand.vmem [shape: f32[88,128], index: 1, kind: input, shape index: {}]   ;;  %s2161_s2 = inlined_call_operand.vmem [shape: f32[32,128], index: 2, kind: output, shape index: {}]  }
   0x1   :  { %1371 = vmatprep.subr.bf16.mxu0 %v1589_v0  ;;  %v1525_v1 = vld [vmem:[%s2159_s0 + $0x38] sm:$0xff]   ;;  %1387 = vmatprep.mubr.msk.bf16.mxu0 %vm1590_vm0, %v1589_v0  ;;  %v1526_v2 = vld [vmem:[%s2159_s0 + $0x30] sm:$0xff]   ;;  %v1527_v3 = vld [vmem:[%s2159_s0 + $0x28] sm:$0xff]  }
   0x2   :  { %1391 = vmatprep.subr.bf16.mxu1 %v1589_v0  ;;  %1407 = vmatprep.mubr.msk.bf16.mxu1 %vm1590_vm0, %v1589_v0  ;;  %v1533_v4 = vld [vmem:[%s2159_s0 + $0x78] sm:$0xff]   ;;  %v1528_v5 = vld [vmem:[%s2159_s0 + $0x20] sm:$0xff]   ;;  %v1534_v6 = vld [vmem:[%s2159_s0 + $0x70] sm:$0xff]  }
   0x3   :  { %1372 = vmatpush3.bf16.msra.mxu0 %v1525_v1  ;;  %1392 = vmatpush3.bf16.msra.mxu1 %v1533_v4  ;;  %v1529_v7 = vld [vmem:[%s2159_s0 + $0x18] sm:$0xff]   ;;  %v1535_v8 = vld [vmem:[%s2159_s0 + $0x68] sm:$0xff]   ;;  %v1530_v9 = vld [vmem:[%s2159_s0 + $0x10] sm:$0xff]  }
   0x4   :  { %1373 = vmatprep.subr.bf16.mxu0 %v1589_v0  ;;  %1393 = vmatprep.subr.bf16.mxu1 %v1589_v0  ;;  %v1536_v10 = vld [vmem:[%s2159_s0 + $0x60] sm:$0xff]   ;;  %v1531_v11 = vld [vmem:[%s2159_s0 + $0x8] sm:$0xff]   ;;  %v1537_v12 = vld [vmem:[%s2159_s0 + $0x58] sm:$0xff]  }
   0x5   :  { %v1532_v13 = vld [vmem:[%s2159_s0] sm:$0xff]   ;;  %v1538_v15 = vld [vmem:[%s2159_s0 + $0x50] sm:$0xff]   ;;  %v1539_v17 = vld [vmem:[%s2159_s0 + $0x48] sm:$0xff]   ;;  %1523 = vset.pattern.permute.xlu0 %v1591_v21  ;;  %1524 = vset.pattern.permute.xlu1 %v1591_v21  ;;  %v1593_v21 = vmov 2475754826  }
   0x6   :  { %v12_v14 = vld [vmem:[%s2160_s1] sm:$0x3]  ;;  %v346_v19 = vld [vmem:[%s2160_s1 + $0x8] sm:$0xff]  ;;  %v348_v20 = vld [vmem:[%s2160_s1 + $0x18] sm:$0xff] }
   0x7   :  { %1374 = vmatpush3.bf16.msra.mxu0 %v1526_v2  ;;  %1394 = vmatpush3.bf16.msra.mxu1 %v1534_v6  ;;  %v13_v16 = vpack.c.bf16 %v12_v14, %v12_v14  ;;  %v1540_v18 = vld [vmem:[%s2159_s0 + $0x40] sm:$0xff]   ;;  %v1541_v22 = vld [vmem:[%s2159_s0 + $0xb8] sm:$0xff]   ;;  %v347_v23 = vld [vmem:[%s2160_s1 + $0x10] sm:$0xff] }
   0x8   :  { %1375 = vmatprep.subr.bf16.mxu0 %v1589_v0  ;;  %1395 = vmatprep.subr.bf16.mxu1 %v1589_v0  ;;  %v349_v24 = vld [vmem:[%s2160_s1 + $0x20] sm:$0xff]  ;;  %v1542_v25 = vld [vmem:[%s2159_s0 + $0xb0] sm:$0xff]   ;;  %v1543_v26 = vld [vmem:[%s2159_s0 + $0xa8] sm:$0xff]  }
   0x9   :  { %357 = vperm.xlu0 %1523, %v346_v19   ;;  %367 = vperm.xlu1 %1524, %v348_v20   ;;  %v1544_v27 = vld [vmem:[%s2159_s0 + $0xa0] sm:$0xff]   ;;  %v1545_v28 = vld [vmem:[%s2159_s0 + $0x98] sm:$0xff]   ;;  %v1546_v29 = vld [vmem:[%s2159_s0 + $0x90] sm:$0xff]   ;;  %v1592_v19 = vmov 683565275  }
   0xa   :  { %v1238_v30 = vld [vmem:[%s2160_s1 + $0x50] ss:$0 sm:$0xff]  ;;  %v1547_v38 = vld [vmem:[%s2159_s0 + $0x88] sm:$0xff]   ;;  %v1548_v39 = vld [vmem:[%s2159_s0 + $0x80] sm:$0xff]  }
   0xb   :  { %1376 = vmatpush3.bf16.msra.mxu0 %v1527_v3  ;;  %1396 = vmatpush3.bf16.msra.mxu1 %v1535_v8  ;;  %v1265_v40 = vld [vmem:[%s2160_s1 + $0x28] ss:$0 sm:$0xff]  ;;  %v1549_v45 = vld [vmem:[%s2159_s0 + $0xf8] sm:$0xff]   ;;  %v1550_v46 = vld [vmem:[%s2159_s0 + $0xf0] sm:$0xff]  }
   0xc   :  { %1377 = vmatprep.subr.bf16.mxu0 %v1589_v0  ;;  %1397 = vmatprep.subr.bf16.mxu1 %v1589_v0  ;;  %v1551_v57 = vld [vmem:[%s2159_s0 + $0xe8] sm:$0xff]  }
   0xd   :  { %362 = vperm.xlu0 %1523, %v347_v23   ;;  %372 = vperm.xlu1 %1524, %v349_v24   ;;  %v1594_v23 = vmov 2131351028  }
   0xf   :  { %1378 = vmatpush3.bf16.msra.mxu0 %v1528_v5  ;;  %1398 = vmatpush3.bf16.msra.mxu1 %v1536_v10  ;;  %v1552_v5 = vld [vmem:[%s2159_s0 + $0xe0] sm:$0xff]  }
  0x10   :  { %1379 = vmatprep.subr.bf16.mxu0 %v1589_v0  ;;  %1399 = vmatprep.subr.bf16.mxu1 %v1589_v0 }
  0x13   :  { %1380 = vmatpush3.bf16.msra.mxu0 %v1529_v7  ;;  %1400 = vmatpush3.bf16.msra.mxu1 %v1537_v12 }
  0x14   :  { %1381 = vmatprep.subr.bf16.mxu0 %v1589_v0  ;;  %1401 = vmatprep.subr.bf16.mxu1 %v1589_v0 }
  0x17   :  { %1382 = vmatpush3.bf16.msra.mxu0 %v1530_v9  ;;  %1402 = vmatpush3.bf16.msra.mxu1 %v1538_v15 }
  0x18   :  { %1383 = vmatprep.subr.bf16.mxu0 %v1589_v0  ;;  %1403 = vmatprep.subr.bf16.mxu1 %v1589_v0 }
  0x1b   :  { %1384 = vmatpush3.bf16.msra.mxu0 %v1531_v11  ;;  %1404 = vmatpush3.bf16.msra.mxu1 %v1539_v17  ;;  %v1553_v17 = vld [vmem:[%s2159_s0 + $0xd8] sm:$0xff]  }
  0x1c   :  { %1385 = vmatprep.subr.bf16.mxu0 %v1589_v0  ;;  %1405 = vmatprep.subr.bf16.mxu1 %v1589_v0 }
  0x1f   :  { %1386 = vmatpush3.bf16.msra.mxu0 %v1532_v13  ;;  %1406 = vmatpush3.bf16.msra.mxu1 %v1540_v18 }
  0x20   :  { %1411 = vmatprep.subr.bf16.mxu0 %v1589_v0  ;;  %1431 = vmatprep.subr.bf16.mxu1 %v1549_v45 }
  0x22   :  { %1388 = vmatmul.mubr.bf16.vlgmr.msra.gmra.mxu0 %v13_v16 }
  0x23   :  { %1427 = vmatprep.mubr.msk.bf16.mxu0 %vm1590_vm0, %v1589_v0  ;;  %1412 = vmatpush3.bf16.msra.mxu0 %v1541_v22 }
  0x24   :  { %1413 = vmatprep.subr.bf16.mxu0 %v1589_v0 }
  0x27   :  { %1414 = vmatpush3.bf16.msra.mxu0 %v1542_v25  ;;  %v1595_v25 = vmov 2102212464  }
  0x28   :  { %1415 = vmatprep.subr.bf16.mxu0 %v1589_v0 }
  0x2b   :  { %1416 = vmatpush3.bf16.msra.mxu0 %v1543_v26 }
  0x2c   :  { %1417 = vmatprep.subr.bf16.mxu0 %v1589_v0 }
  0x2f   :  { %1418 = vmatpush3.bf16.msra.mxu0 %v1544_v27  ;;  %v1596_v27 = vmov 920167782  }
  0x30   :  { %1419 = vmatprep.subr.bf16.mxu0 %v1589_v0 }
  0x33   :  { %1420 = vmatpush3.bf16.msra.mxu0 %v1545_v28 }
  0x34   :  { %1421 = vmatprep.subr.bf16.mxu0 %v1589_v0 }
  0x37   :  { %1422 = vmatpush3.bf16.msra.mxu0 %v1546_v29 }
  0x38   :  { %1423 = vmatprep.subr.bf16.mxu0 %v1589_v0 }
  0x3b   :  { %1424 = vmatpush3.bf16.msra.mxu0 %v1547_v38 }
  0x3c   :  { %1425 = vmatprep.subr.bf16.mxu0 %v1589_v0 }
  0x3f   :  { %1426 = vmatpush3.bf16.msra.mxu0 %v1548_v39 }
  0x84   :  { %v358_v41 = vpop.permute.xlu0 %357  ;;  %v368_v43 = vpop.permute.xlu1 %367 }
  0x85   :  { %v1736_v42 = vmul.f32 %v1265_v40, %v358_v41  ;;  %v1738_v44 = vmul.f32 %v1265_v40, %v368_v43 }
  0x87   :  { %v379_v47 = vand.u32 2147483647, %v1736_v42  ;;  %v382_v48 = vand.u32 2139095040, %v1736_v42  ;;  %v585_v49 = vand.u32 2147483647, %v1738_v44  ;;  %v588_v50 = vand.u32 2139095040, %v1738_v44 }
  0x88   :  { %v363_v51 = vpop.permute.xlu0 %362  ;;  %v373_v59 = vpop.permute.xlu1 %372 }
  0x89   :  { %v383_v52 = vshrl.u32 %v382_v48, 23  ;;  %v386_v53 = vand.u32 8388607, %v379_v47  ;;  %v1752_v54 = vmul.f32 %v1265_v40, %v363_v51  ;;  %v589_v55 = vshrl.u32 %v588_v50, 23 }
  0x8a   :  { %v592_v56 = vand.u32 8388607, %v585_v49  ;;  %v1761_v4 = vmul.f32 %v1265_v40, %v373_v59 }
  0x8b   :  { %v1266_v58 = vadd.s32 4294967169, %v383_v52  ;;  %v387_v60 = vor.u32 8388608, %v386_v53  ;;  %v1274_v61 = vadd.s32 4294967169, %v589_v55  ;;  %v485_v62 = vand.u32 2139095040, %v1752_v54 }
  0x8c   :  { %v482_v0 = vand.u32 2147483647, %v1752_v54  ;;  %v593_v1 = vor.u32 8388608, %v592_v56  ;;  %v691_v16 = vand.u32 2139095040, %v1761_v4 }
  0x8d   :  { %v389_v63 = vadd.s32 1, %v1266_v58  ;;  %v595_v2 = vadd.s32 1, %v1274_v61  ;;  %v486_v3 = vshrl.u32 %v485_v62, 23  ;;  %v1766_v7 = vshll.u32 %v387_v60, 8  ;;  %v1555_v58 = vld [vmem:[%s2159_s0 + $0xc8] sm:$0xff]  }
  0x8e   :  { %v1772_v12 = vand.u32 8388607, %v482_v0  ;;  %v1778_v15 = vshll.u32 %v593_v1, 8 }
  0x8f   :  { %vm390_vm1 = vcmp.gt.s32.totalorder %v389_v63, 0  ;;  %vm596_vm2 = vcmp.gt.s32.totalorder %v595_v2, 0  ;;  %v1270_v8 = vadd.s32 4294967169, %v486_v3 }
  0x90   :  { %v391_v6 = vsel %vm390_vm1, %v389_v63, 0  ;;  %v597_v11 = vsel %vm596_vm2, %v595_v2, 0 }
  0x91   :  { %v1768_v9 = vshrl.u32 %v391_v6, 5  ;;  %v393_v10 = vand.u32 31, %v391_v6  ;;  %v1774_v13 = vshrl.u32 %v597_v11, 5  ;;  %v1776_v14 = vand.u32 31, %v597_v11 }
  0x92   :  { %v1790_v29 = vadd.s32 1, %v1270_v8 }
  0x93   :  { %v394_v18 = vsub.s32 32, %v393_v10  ;;  %v396_v20 = vshll.u32 %v1592_v19, %v393_v10  ;;  %v399_v22 = vshll.u32 %v1593_v21, %v393_v10  ;;  %v402_v24 = vshll.u32 %v1594_v23, %v393_v10 }
  0x94   :  { %v405_v26 = vshll.u32 %v1595_v25, %v393_v10  ;;  %v408_v28 = vshll.u32 %v1596_v27, %v393_v10  ;;  %vm411_vm3 = vcmp.lt.s32.totalorder %v1768_v9, 1  ;;  %vm412_vm4 = vcmp.lt.s32.totalorder %v1768_v9, 2 }
  0x95   :  { %vm414_vm5 = vcmp.lt.s32.totalorder %v1768_v9, 4  ;;  %v600_v41 = vsub.s32 32, %v1776_v14  ;;  %vm413_vm6 = vcmp.lt.s32.totalorder %v1768_v9, 3  ;;  %vm617_vm7 = vcmp.lt.s32.totalorder %v1774_v13, 1 }
  0x96   :  { %vm618_vm8 = vcmp.lt.s32.totalorder %v1774_v13, 2  ;;  %vm619_vm10 = vcmp.lt.s32.totalorder %v1774_v13, 3  ;;  %vm620_vm11 = vcmp.lt.s32.totalorder %v1774_v13, 4  ;;  %vm493_vm12 = vcmp.gt.s32.totalorder %v1790_v29, 0 }
  0x97   :  { %v601_v61 = vshrl.u32 %v1592_v19, %v600_v41  ;;  %v603_v62 = vshrl.u32 %v1593_v21, %v600_v41  ;;  %v606_v3 = vshrl.u32 %v1594_v23, %v600_v41  ;;  %v609_v9 = vshrl.u32 %v1595_v25, %v600_v41 }
  0xe2   :  { %v117_v31 = vpop.f32.mrf.mxu0 }
  0xe3   :  { %v118_v32 = vadd.f32 %v1238_v30, %v117_v31  ;;  %v395_v30 = vshrl.u32 %v1592_v19, %v394_v18  ;;  %v397_v31 = vshrl.u32 %v1593_v21, %v394_v18 }
  0xe4   :  { %v1389_v33 = vpop.f32.mrf.mxu0 }
  0xe5   :  { %v123_v34 = vmax.f32 %v118_v32, 0.0  ;;  %v400_v32 = vshrl.u32 %v1594_v23, %v394_v18  ;;  %v403_v33 = vshrl.u32 %v1595_v25, %v394_v18  ;;  %v398_v38 = vor.u32 %v397_v31, %v396_v20  ;;  %v1556_v20 = vld [vmem:[%s2159_s0 + $0xc0] sm:$0xff]  }
  0xe6   :  { %v120_v35 = vpop.f32.mrf.mxu0 }
  0xe7   :  { %v124_v36 = vpack.c.bf16 %v123_v34, %v123_v34  ;;  %v406_v34 = vshrl.u32 %v1596_v27, %v394_v18  ;;  %v1597_v35 = vmov 1326507024   ;;  %v401_v39 = vor.u32 %v400_v32, %v399_v22 }
  0xe8   :  { %v1390_v37 = vpop.f32.mrf.mxu0  ;;  %v404_v40 = vor.u32 %v403_v33, %v402_v24  ;;  %v415_v48 = vsel %vm411_vm3, %v395_v30, %v398_v38  ;;  %v611_v22 = vshll.u32 %v1595_v25, %v1776_v14  ;;  %v612_v24 = vshrl.u32 %v1596_v27, %v600_v41 }
  0xe9   :  { %1408 = vmatmul.mubr.bf16.vlgmr.msra.gmra.mxu1 %v124_v36  ;;  %v409_v36 = vshrl.u32 %v1597_v35, %v394_v18  ;;  %v1554_v37 = vld [vmem:[%s2159_s0 + $0xd0] sm:$0xff]   ;;  %v407_v43 = vor.u32 %v406_v34, %v405_v26  ;;  %v419_v51 = vsel %vm411_vm3, %v398_v38, %v401_v39  ;;  %v608_v18 = vshll.u32 %v1594_v23, %v1776_v14 }
  0xea   :  { %1432 = vmatpush3.bf16.msra.mxu1 %v1549_v45  ;;  %v416_v50 = vsel %vm414_vm5, %v404_v40, 2102212464  ;;  %v423_v52 = vsel %vm411_vm3, %v401_v39, %v404_v40  ;;  %v614_v26 = vshll.u32 %v1596_v27, %v1776_v14  ;;  %v613_v33 = vor.u32 %v612_v24, %v611_v22 }
  0xeb   :  { %1433 = vmatprep.subr.bf16.mxu1 %v1550_v46  ;;  %v410_v45 = vor.u32 %v409_v36, %v408_v28  ;;  %v417_v53 = vsel %vm413_vm6, %v401_v39, %v416_v50  ;;  %v420_v55 = vsel %vm414_vm5, %v407_v43, 920167782  ;;  %v615_v28 = vshrl.u32 %v1597_v35, %v600_v41 }
  0xec   :  { %v421_v59 = vsel %vm413_vm6, %v404_v40, %v420_v55  ;;  %v418_v63 = vsel %vm412_vm4, %v415_v48, %v417_v53  ;;  %v610_v31 = vor.u32 %v609_v9, %v608_v18  ;;  %v626_v38 = vsel %vm620_vm11, %v613_v33, 920167782 }
  0xed   :  { %v424_v56 = vsel %vm414_vm5, %v410_v45, 1326507024  ;;  %v422_v1 = vsel %vm412_vm4, %v419_v51, %v421_v59  ;;  %v434_v30 = vmul.u32 %v1766_v7, %v418_v63  ;;  %v616_v34 = vor.u32 %v615_v28, %v614_v26 }
  0xee   :  { %1434 = vmatpush3.bf16.msra.mxu1 %v1550_v46  ;;  %v602_v46 = vshll.u32 %v1592_v19, %v1776_v14  ;;  %v425_v60 = vsel %vm413_vm6, %v407_v43, %v424_v56  ;;  %v1838_v8 = vmul.u32.u64.low %v1766_v7, %v422_v1  ;;  %v1839_v10 = vmul.u32.u64.high %v1766_v7, %v422_v1, %v1838_v8 }
  0xef   :  { %1435 = vmatprep.subr.bf16.mxu1 %v1551_v57  ;;  %v426_v2 = vsel %vm412_vm4, %v423_v52, %v425_v60  ;;  %v627_v43 = vsel %vm619_vm10, %v610_v31, %v626_v38  ;;  %v630_v45 = vsel %vm620_vm11, %v616_v34, 1326507024 }
  0xf0   :  { %v604_v11 = vor.u32 %v603_v62, %v602_v46  ;;  %v437_v32 = vadd.s32 1, %v1839_v10  ;;  %v631_v50 = vsel %vm619_vm10, %v613_v33, %v630_v45  ;;  %v490_v62 = vor.u32 8388608, %v1772_v12 }
  0xf2   :  { %1436 = vmatpush3.bf16.msra.mxu1 %v1551_v57  ;;  %v605_v57 = vshll.u32 %v1593_v21, %v1776_v14  ;;  %v621_v14 = vsel %vm617_vm7, %v601_v61, %v604_v11 }
  0xf3   :  { %1437 = vmatprep.subr.bf16.mxu1 %v1552_v5 }
  0xf6   :  { %1438 = vmatpush3.bf16.msra.mxu1 %v1552_v5  ;;  %v1834_v5 = vmul.u32.u64.low %v1766_v7, %v426_v2  ;;  %v1835_v6 = vmul.u32.u64.high %v1766_v7, %v426_v2, %v1834_v5  ;;  %v692_v2 = vshrl.u32 %v691_v16, 23 }
  0xf7   :  { %1439 = vmatprep.subr.bf16.mxu1 %v1553_v17 }
  0xf8   :  { %vm436_vm9 = vc.u32 %v1835_v6, %v1838_v8  ;;  %v1278_v38 = vadd.s32 4294967169, %v692_v2  ;;  %v435_v2 = vadd.s32 %v1838_v8, %v1835_v6 }
  0xf9   :  { %v438_v7 = vsel %vm436_vm9, %v437_v32, %v1839_v10 }
  0xfa   :  { %1440 = vmatpush3.bf16.msra.mxu1 %v1553_v17  ;;  %v607_v17 = vor.u32 %v606_v3, %v605_v57  ;;  %v439_v40 = vadd.s32 %v438_v7, %v434_v30 }
  0xfb   :  { %1441 = vmatprep.subr.bf16.mxu1 %v1554_v37 }
  0xfc   :  { %v625_v36 = vsel %vm617_vm7, %v604_v11, %v607_v17  ;;  %v629_v39 = vsel %vm617_vm7, %v607_v17, %v610_v31  ;;  %v440_v51 = vadd.s32 536870912, %v439_v40 }
  0xfd   :  { %v628_v48 = vsel %vm618_vm8, %v625_v36, %v627_v43  ;;  %v632_v52 = vsel %vm618_vm8, %v629_v39, %v631_v50 }
  0xfe   :  { %1442 = vmatpush3.bf16.msra.mxu1 %v1554_v37  ;;  %v622_v37 = vsel %vm620_vm11, %v610_v31, 2102212464  ;;  %v1877_v53 = vmul.u32.u64.low %v1778_v15, %v628_v48  ;;  %v1878_v55 = vmul.u32.u64.high %v1778_v15, %v628_v48, %v1877_v53  ;;  %v1886_v59 = vshrl.u32 %v440_v51, 30 }
  0xff   :  { %1443 = vmatprep.subr.bf16.mxu1 %v1555_v58  ;;  %v623_v41 = vsel %vm619_vm10, %v607_v17, %v622_v37  ;;  %v1882_v56 = vmul.u32.u64.low %v1778_v15, %v632_v52  ;;  %v1883_v57 = vmul.u32.u64.high %v1778_v15, %v632_v52, %v1882_v56  ;;  %vm381_vm10 = vcmp.lt.s32.totalorder %v1736_v42, 0 }
 0x100   :  { %v624_v46 = vsel %vm618_vm8, %v621_v14, %v623_v41  ;;  %v442_v13 = vshll.u32 %v1886_v59, 30  ;;  %v643_v63 = vadd.s32 1, %v1878_v55  ;;  %vm1984_vm11 = vcmp.le.f32.partialorder %v379_v47, 0.7853982 }
 0x101   :  { %v640_v61 = vmul.u32 %v1778_v15, %v624_v46  ;;  %vm642_vm13 = vc.u32 %v1883_v57, %v1877_v53 }
 0x102   :  { %1444 = vmatpush3.bf16.msra.mxu1 %v1555_v58  ;;  %v494_v58 = vsel %vm493_vm12, %v1790_v29, 0  ;;  %v1898_v10 = vsub.s32 %v439_v40, %v442_v13  ;;  %v644_v12 = vsel %vm642_vm13, %v643_v63, %v1878_v55  ;;  %v530_v55 = vshll.u32 %v490_v62, 8 }
 0x103   :  { %1445 = vmatprep.subr.bf16.mxu1 %v1556_v20  ;;  %v496_v60 = vand.u32 31, %v494_v58  ;;  %v495_v3 = vshrl.u32 %v494_v58, 5  ;;  %v645_v17 = vadd.s32 %v644_v12, %v640_v61 }
 0x105   :  { %v497_v1 = vsub.s32 32, %v496_v60  ;;  %v499_v29 = vshll.u32 %v1592_v19, %v496_v60  ;;  %v502_v5 = vshll.u32 %v1593_v21, %v496_v60  ;;  %v505_v11 = vshll.u32 %v1594_v23, %v496_v60 }
 0x106   :  { %1446 = vmatpush3.bf16.msra.mxu1 %v1556_v20  ;;  %v508_v9 = vshll.u32 %v1595_v25, %v496_v60  ;;  %v445_v20 = vsub.s32 0, %v1898_v10  ;;  %v511_v26 = vshll.u32 %v1596_v27, %v496_v60  ;;  %v646_v28 = vadd.s32 536870912, %v645_v17 }
 0x107   :  { %v500_v15 = vshrl.u32 %v1593_v21, %v497_v1  ;;  %v503_v18 = vshrl.u32 %v1594_v23, %v497_v1  ;;  %v506_v16 = vshrl.u32 %v1595_v25, %v497_v1  ;;  %v498_v22 = vshrl.u32 %v1592_v19, %v497_v1 }
 0x108   :  { %v509_v24 = vshrl.u32 %v1596_v27, %v497_v1  ;;  %v512_v32 = vshrl.u32 %v1597_v35, %v497_v1  ;;  %v1267_v33 = vmin.u32 %v445_v20, %v1898_v10  ;;  %vm514_vm14 = vcmp.lt.s32.totalorder %v495_v3, 1 }
 0x109   :  { %v501_v30 = vor.u32 %v500_v15, %v499_v29  ;;  %v504_v31 = vor.u32 %v503_v18, %v502_v5  ;;  %v507_v34 = vor.u32 %v506_v16, %v505_v11  ;;  %v1912_v36 = vshrl.u32 %v646_v28, 30 }
 0x10a   :  { %v510_v14 = vor.u32 %v509_v24, %v508_v9  ;;  %v513_v7 = vor.u32 %v512_v32, %v511_v26  ;;  %vm516_vm15 = vcmp.lt.s32.totalorder %v495_v3, 3  ;;  %vm517_vm0 = vcmp.lt.s32.totalorder %v495_v3, 4 }
 0x10b   :  { %v447_v37 = vclz %v1267_v33  ;;  %vm515_vm1 = vcmp.lt.s32.totalorder %v495_v3, 2  ;;  %v648_v39 = vshll.u32 %v1912_v36, 30  ;;  %v519_v40 = vsel %vm517_vm0, %v507_v34, 2102212464 }
 0x10c   :  { %v522_v41 = vsel %vm514_vm14, %v501_v30, %v504_v31  ;;  %v523_v43 = vsel %vm517_vm0, %v510_v14, 920167782  ;;  %v526_v48 = vsel %vm514_vm14, %v504_v31, %v507_v34  ;;  %v518_v51 = vsel %vm514_vm14, %v498_v22, %v501_v30 }
 0x10d   :  { %v1268_v45 = vadd.s32 4294967294, %v447_v37  ;;  %v524_v46 = vsel %vm516_vm15, %v507_v34, %v523_v43  ;;  %v1918_v50 = vsub.s32 %v645_v17, %v648_v39  ;;  %v527_v52 = vsel %vm517_vm0, %v513_v7, 1326507024 }
 0x10e   :  { %v520_v56 = vsel %vm516_vm15, %v504_v31, %v519_v40  ;;  %v525_v58 = vsel %vm515_vm1, %v522_v41, %v524_v46  ;;  %v528_v60 = vsel %vm516_vm15, %v510_v14, %v527_v52  ;;  %v698_v1 = vadd.s32 1, %v1278_v38 }
 0x10f   :  { %vm1269_vm2 = vcmp.lt.s32.totalorder %v1268_v45, 0  ;;  %v651_v13 = vsub.s32 0, %v1918_v50  ;;  %v529_v63 = vsel %vm515_vm1, %v526_v48, %v528_v60  ;;  %v521_v17 = vsel %vm515_vm1, %v518_v51, %v520_v56 }
 0x110   :  { %v450_v61 = vsel %vm1269_vm2, 0, %v1268_v45  ;;  %v1929_v12 = vmul.u32.u64.low %v530_v55, %v529_v63  ;;  %v1930_v15 = vmul.u32.u64.high %v530_v55, %v529_v63, %v1929_v12  ;;  %vm699_vm3 = vcmp.gt.s32.totalorder %v698_v1, 0 }
 0x111   :  { %v451_v29 = vsub.s32 32, %v450_v61  ;;  %v455_v5 = vsub.s32 4294967266, %v450_v61  ;;  %v1275_v62 = vmin.u32 %v651_v13, %v1918_v50  ;;  %v688_v20 = vand.u32 2147483647, %v1761_v4 }
 0x112   :  { %v1933_v18 = vmul.u32.u64.low %v530_v55, %v525_v58  ;;  %v1934_v16 = vmul.u32.u64.high %v530_v55, %v525_v58, %v1933_v18  ;;  %v700_v22 = vsel %vm699_vm3, %v698_v1, 0  ;;  %v452_v6 = vshll.u32 %v1898_v10, %v450_v61 }
 0x113   :  { %v456_v11 = vadd.s32 127, %v455_v5  ;;  %v653_v9 = vclz %v1275_v62  ;;  %v453_v8 = vshrl.u32 %v435_v2, %v451_v29  ;;  %v702_v24 = vand.u32 31, %v700_v22 }
 0x114   :  { %v537_v30 = vmul.u32 %v530_v55, %v521_v17  ;;  %vm539_vm4 = vc.u32 %v1930_v15, %v1933_v18  ;;  %v540_v3 = vadd.s32 1, %v1934_v16  ;;  %v695_v32 = vand.u32 8388607, %v688_v20 }
 0x115   :  { %v457_v26 = vshll.u32 %v456_v11, 23  ;;  %v1276_v28 = vadd.s32 4294967294, %v653_v9  ;;  %v703_v31 = vsub.s32 32, %v702_v24  ;;  %v454_v33 = vor.u32 %v453_v8, %v452_v6 }
 0x116   :  { %v541_v34 = vsel %vm539_vm4, %v540_v3, %v1934_v16  ;;  %v705_v7 = vshll.u32 %v1592_v19, %v702_v24  ;;  %v708_v38 = vshll.u32 %v1593_v21, %v702_v24  ;;  %v696_v41 = vor.u32 8388608, %v695_v32 }
 0x117   :  { %v458_v14 = vor.u32 4788187, %v457_v26  ;;  %vm1277_vm5 = vcmp.lt.s32.totalorder %v1276_v28, 0  ;;  %v542_v10 = vadd.s32 %v541_v34, %v537_v30  ;;  %v706_v37 = vshrl.u32 %v1593_v21, %v703_v31 }
 0x118   :  { %v709_v39 = vshrl.u32 %v1594_v23, %v703_v31  ;;  %v701_v43 = vshrl.u32 %v700_v22, 5  ;;  %v461_v45 = vcvt.s32.f32 %v454_v33  ;;  %v711_v46 = vshll.u32 %v1594_v23, %v702_v24 }
 0x119   :  { %v543_v40 = vadd.s32 536870912, %v542_v10  ;;  %v712_v48 = vshrl.u32 %v1595_v25, %v703_v31  ;;  %v714_v51 = vshll.u32 %v1595_v25, %v702_v24  ;;  %v459_v52 = vand.u32 2147483647, %v458_v14 }
 0x11a   :  { %v1952_v55 = vsel %vm1277_vm5, 0, %v1276_v28  ;;  %v715_v58 = vshrl.u32 %v1596_v27, %v703_v31  ;;  %v707_v21 = vor.u32 %v706_v37, %v705_v7  ;;  %v710_v60 = vor.u32 %v709_v39, %v708_v38 }
 0x11b   :  { %v1954_v56 = vshrl.u32 %v543_v40, 30  ;;  %v717_v61 = vshll.u32 %v1596_v27, %v702_v24  ;;  %v718_v13 = vshrl.u32 %v1597_v35, %v703_v31  ;;  %v704_v23 = vshrl.u32 %v1592_v19, %v703_v31 }
 0x11c   :  { %vm720_vm6 = vcmp.lt.s32.totalorder %v701_v43, 1  ;;  %v713_v1 = vor.u32 %v712_v48, %v711_v46  ;;  %v716_v25 = vor.u32 %v715_v58, %v714_v51  ;;  %v661_v29 = vsub.s32 4294967266, %v1952_v55 }
 0x11d   :  { %v545_v63 = vshll.u32 %v1954_v56, 30  ;;  %v719_v2 = vor.u32 %v718_v13, %v717_v61  ;;  %vm722_vm7 = vcmp.lt.s32.totalorder %v701_v43, 3  ;;  %v736_v62 = vshll.u32 %v696_v41, 8 }
 0x11e   :  { %v462_v12 = vmul.f32 %v461_v45, %v459_v52  ;;  %vm721_vm8 = vcmp.lt.s32.totalorder %v701_v43, 2  ;;  %vm723_vm9 = vcmp.lt.s32.totalorder %v701_v43, 4  ;;  %v728_v27 = vsel %vm720_vm6, %v707_v21, %v710_v60 }
 0x11f   :  { %v546_v5 = vsub.s32 %v542_v10, %v545_v63  ;;  %v724_v35 = vsel %vm720_vm6, %v704_v23, %v707_v21  ;;  %v725_v17 = vsel %vm723_vm9, %v713_v1, 2102212464  ;;  %v729_v16 = vsel %vm723_vm9, %v716_v25, 920167782 }
 0x120   :  { %v726_v19 = vsel %vm722_vm7, %v710_v60, %v725_v17  ;;  %v730_v9 = vsel %vm722_vm7, %v713_v1, %v729_v16  ;;  %v732_v22 = vsel %vm720_vm6, %v710_v60, %v713_v1  ;;  %v733_v6 = vsel %vm723_vm9, %v719_v2, 1326507024 }
 0x121   :  { %v548_v11 = vsub.s32 0, %v546_v5  ;;  %v731_v24 = vsel %vm721_vm8, %v728_v27, %v730_v9  ;;  %v641_v26 = vadd.s32 %v1877_v53, %v1883_v57  ;;  %v734_v28 = vsel %vm722_vm7, %v716_v25, %v733_v6 }
 0x122   :  { %v1971_v30 = vmul.u32.u64.low %v736_v62, %v731_v24  ;;  %v1972_v3 = vmul.u32.u64.high %v736_v62, %v731_v24, %v1971_v30  ;;  %v657_v31 = vsub.s32 32, %v1952_v55  ;;  %v727_v33 = vsel %vm721_vm8, %v724_v35, %v726_v19 }
 0x123   :  { %v1271_v8 = vmin.u32 %v548_v11, %v546_v5  ;;  %v735_v34 = vsel %vm721_vm8, %v732_v22, %v734_v28  ;;  %v463_v14 = vxor.u32 2147483648, %v462_v12  ;;  %v662_v10 = vadd.s32 127, %v661_v29 }
 0x124   :  { %v1978_v7 = vmul.u32.u64.low %v736_v62, %v735_v34  ;;  %v1979_v37 = vmul.u32.u64.high %v736_v62, %v735_v34, %v1978_v7  ;;  %v743_v38 = vmul.u32 %v736_v62, %v727_v33  ;;  %v746_v39 = vadd.s32 1, %v1972_v3 }
 0x125   :  { %v550_v32 = vclz %v1271_v8  ;;  %v658_v40 = vshll.u32 %v1918_v50, %v1952_v55  ;;  %v659_v41 = vshrl.u32 %v641_v26, %v657_v31  ;;  %v538_v43 = vadd.s32 %v1933_v18, %v1930_v15 }
 0x126   :  { %v464_v45 = vsel %vm381_vm10, %v463_v14, %v462_v12  ;;  %v663_v46 = vshll.u32 %v662_v10, 23  ;;  %vm745_vm13 = vc.u32 %v1979_v37, %v1971_v30  ;;  %v465_v11 = vsub.s32 4, %v1886_v59 }
 0x127   :  { %v1272_v53 = vadd.s32 4294967294, %v550_v32  ;;  %v747_v58 = vsel %vm745_vm13, %v746_v39, %v1972_v3  ;;  %v467_v15 = vsel %vm1984_vm11, %v1736_v42, %v464_v45  ;;  %v660_v18 = vor.u32 %v659_v41, %v658_v40 }
 0x128   :  { %v748_v21 = vadd.s32 %v747_v58, %v743_v38  ;;  %v664_v60 = vor.u32 4788187, %v663_v46  ;;  %1573 = vcosq.f32 %v467_v15  ;;  %vm484_vm14 = vcmp.lt.s32.totalorder %v1752_v54, 0 }
 0x129   :  { %vm1273_vm12 = vcmp.lt.s32.totalorder %v1272_v53, 0  ;;  %1575 = vsinq.f32 %v467_v15  ;;  %v667_v29 = vcvt.s32.f32 %v660_v18  ;;  %vm2008_vm15 = vcmp.le.f32.partialorder %v482_v0, 0.7853982 }
 0x12a   :  { %v553_v48 = vsel %vm1273_vm12, 0, %v1272_v53  ;;  %v749_v61 = vadd.s32 536870912, %v748_v21  ;;  %v665_v2 = vand.u32 2147483647, %v664_v60  ;;  %v466_v6 = vsel %vm381_vm10, %v465_v11, %v1886_v59 }
 0x12b   :  { %v554_v47 = vsub.s32 32, %v553_v48  ;;  %v555_v51 = vshll.u32 %v546_v5, %v553_v48  ;;  %v558_v52 = vsub.s32 4294967266, %v553_v48  ;;  %v568_v0 = vsub.s32 4, %v1954_v56 }
 0x12c   :  { %v2001_v23 = vshrl.u32 %v749_v61, 30  ;;  %v668_v35 = vmul.f32 %v667_v29, %v665_v2  ;;  %vm587_vm0 = vcmp.lt.s32.totalorder %v1738_v44, 0  ;;  %v468_v3 = vsel %vm1984_vm11, 0, %v466_v6 }
 0x12d   :  { %v556_v50 = vshrl.u32 %v538_v43, %v554_v47  ;;  %v559_v55 = vadd.s32 127, %v558_v52  ;;  %vm2026_vm1 = vcmp.le.f32.partialorder %v585_v49, 0.7853982  ;;  %v744_v33 = vadd.s32 %v1971_v30, %v1979_v37 }
 0x12e   :  { %v751_v5 = vshll.u32 %v2001_v23, 30  ;;  %v669_v8 = vxor.u32 2147483648, %v668_v35  ;;  %v569_v34 = vsel %vm484_vm14, %v568_v0, %v1954_v56  ;;  %v472_v7 = vand.u32 3, %v468_v3 }
 0x12f   :  { %v557_v13 = vor.u32 %v556_v50, %v555_v51  ;;  %v560_v63 = vshll.u32 %v559_v55, 23  ;;  %v571_v39 = vsel %vm2008_vm15, 0, %v569_v34  ;;  %vm471_vm7 = vweird.f32 %v1736_v42 }
 0x130   :  { %v752_v12 = vsub.s32 %v748_v21, %v751_v5  ;;  %v670_v32 = vsel %vm587_vm0, %v669_v8, %v668_v35  ;;  %vm474_vm3 = vcmp.eq.s32.totalorder %v472_v7, 0  ;;  %vm477_vm4 = vcmp.eq.s32.totalorder %v472_v7, 2 }
 0x131   :  { %v561_v1 = vor.u32 4788187, %v560_v63  ;;  %v564_v25 = vcvt.s32.f32 %v557_v13  ;;  %v673_v38 = vsel %vm2026_vm1, %v1738_v44, %v670_v32  ;;  %v575_v45 = vand.u32 3, %v571_v39  ;;  %v915_v39 = vld [vmem:[%s2160_s1 + $0x30] sm:$0xff]  ;;  %v1565_v13 = vld [vmem:[%s2159_s0 + $0x178] sm:$0xff]  }
 0x132   :  { %v754_v17 = vsub.s32 0, %v752_v12  ;;  %vm473_vm5 = vcmp.lt.s32.totalorder %v472_v7, 2  ;;  %v671_v15 = vsub.s32 4, %v1912_v36  ;;  %vm690_vm10 = vcmp.lt.s32.totalorder %v1761_v4, 0 }
 0x133   :  { %v562_v62 = vand.u32 2147483647, %v561_v1  ;;  %vm580_vm6 = vcmp.eq.s32.totalorder %v575_v45, 2  ;;  %vm577_vm8 = vcmp.eq.s32.totalorder %v575_v45, 0  ;;  %vm576_vm9 = vcmp.lt.s32.totalorder %v575_v45, 2 }
 0x134   :  { %v1279_v9 = vmin.u32 %v754_v17, %v752_v12  ;;  %vm574_vm11 = vweird.f32 %v1752_v54  ;;  %vm2048_vm12 = vcmp.le.f32.partialorder %v688_v20, 0.7853982  ;;  %v672_v2 = vsel %vm587_vm0, %v671_v15, %v1912_v36 }
 0x135   :  { %v565_v27 = vmul.f32 %v564_v25, %v562_v62  ;;  %v1574_v31 = vpop.eup %1573 }
 0x136   :  { %v756_v26 = vclz %v1279_v9  ;;  %v1576_v14 = vpop.eup %1575  ;;  %v478_v41 = vxor.u32 2147483648, %v1574_v31 }
 0x137   :  { %v566_v19 = vxor.u32 2147483648, %v565_v27  ;;  %v475_v37 = vxor.u32 2147483648, %v1576_v14 }
 0x138   :  { %v1280_v28 = vadd.s32 4294967294, %v756_v26  ;;  %v479_v51 = vsel %vm477_vm4, %v478_v41, %v1576_v14  ;;  %vm780_vm4 = vweird.f32 %v1761_v4  ;;  %v1560_v41 = vld [vmem:[%s2159_s0 + $0x120] sm:$0xff]  }
 0x139   :  { %v567_v22 = vsel %vm484_vm14, %v566_v19, %v565_v27  ;;  %v476_v47 = vsel %vm474_vm3, %v1574_v31, %v475_v37  ;;  %v674_v27 = vsel %vm2026_vm1, 0, %v672_v2  ;;  %vm677_vm1 = vweird.f32 %v1738_v44  ;;  %v916_v44 = vld [vmem:[%s2160_s1 + $0x38] sm:$0xff]  ;;  %v1559_v37 = vld [vmem:[%s2159_s0 + $0x128] sm:$0xff]  }
 0x13a   :  { %v570_v24 = vsel %vm2008_vm15, %v1752_v54, %v567_v22  ;;  %vm1281_vm2 = vcmp.lt.s32.totalorder %v1280_v28, 0  ;;  %v480_v50 = vsel %vm473_vm5, %v476_v47, %v479_v51  ;;  %v774_v54 = vsub.s32 4, %v2001_v23 }
 0x13b   :  { %1577 = vcosq.f32 %v570_v24  ;;  %v759_v10 = vsel %vm1281_vm2, 0, %v1280_v28  ;;  %v481_v63 = vsel %vm471_vm7, nan, %v480_v50  ;;  %v678_v19 = vand.u32 3, %v674_v27 }
 0x13c   :  { %1579 = vsinq.f32 %v570_v24  ;;  %v760_v53 = vsub.s32 32, %v759_v10  ;;  %v761_v49 = vshll.u32 %v752_v12, %v759_v10  ;;  %v764_v57 = vsub.s32 4294967266, %v759_v10  ;;  %v1247_v12 = vld [vmem:[%s2160_s1 + $0x51] ss:$0 sm:$0xff] }
 0x13d   :  { %1581 = vcosq.f32 %v673_v38  ;;  %v775_v35 = vsel %vm690_vm10, %v774_v54, %v2001_v23  ;;  %vm680_vm13 = vcmp.eq.s32.totalorder %v678_v19, 0  ;;  %vm683_vm14 = vcmp.eq.s32.totalorder %v678_v19, 2  ;;  %v1282_v54 = vld [vmem:[%s2160_s1 + $0x53] ss:$0 sm:$0xff] }
 0x13e   :  { %v762_v40 = vshrl.u32 %v744_v33, %v760_v53  ;;  %v765_v30 = vadd.s32 127, %v764_v57  ;;  %1583 = vsinq.f32 %v673_v38  ;;  %v777_v6 = vsel %vm2048_vm12, 0, %v775_v35 }
 0x13f   :  { %v781_v3 = vand.u32 3, %v777_v6  ;;  %vm679_vm15 = vcmp.lt.s32.totalorder %v678_v19, 2  ;;  %vm922_vm5 = vcmask 15360  }
 0x140   :  { %v763_v56 = vor.u32 %v762_v40, %v761_v49  ;;  %v766_v43 = vshll.u32 %v765_v30, 23  ;;  %v919_v40 = vpack.c.bf16 %v916_v44, %v915_v39  ;;  %v1558_v30 = vld [vmem:[%s2159_s0 + $0x130] sm:$0xff]  }
 0x141   :  { %vm786_vm0 = vcmp.eq.s32.totalorder %v781_v3, 2  ;;  %vm783_vm2 = vcmp.eq.s32.totalorder %v781_v3, 0  ;;  %vm782_vm3 = vcmp.lt.s32.totalorder %v781_v3, 2 }
 0x142   :  { %v767_v46 = vor.u32 4788187, %v766_v43  ;;  %v770_v48 = vcvt.s32.f32 %v763_v56  ;;  %v1561_v56 = vld [vmem:[%s2159_s0 + $0x118] sm:$0xff]   ;;  %v1256_v43 = vld [vmem:[%s2160_s1 + $0x52] ss:$0 sm:$0xff] }
 0x144   :  { %v768_v58 = vand.u32 2147483647, %v767_v46 }
 0x146   :  { %v771_v18 = vmul.f32 %v770_v48, %v768_v58  ;;  %v918_v58 = vld [vmem:[%s2160_s1 + $0x48] sm:$0xff] }
 0x148   :  { %v1578_v52 = vpop.eup %1577  ;;  %v772_v42 = vxor.u32 2147483648, %v771_v18 }
 0x149   :  { %v1580_v21 = vpop.eup %1579  ;;  %v581_v55 = vxor.u32 2147483648, %v1578_v52 }
 0x14a   :  { %v578_v60 = vxor.u32 2147483648, %v1580_v21  ;;  %v773_v29 = vsel %vm690_vm10, %v772_v42, %v771_v18  ;;  %v1582_v36 = vpop.eup %1581  ;;  %v1562_v18 = vld [vmem:[%s2159_s0 + $0x110] sm:$0xff]  }
 0x14b   :  { %v582_v61 = vsel %vm580_vm6, %v581_v55, %v1580_v21  ;;  %v776_v20 = vsel %vm2048_vm12, %v1761_v4, %v773_v29  ;;  %v1584_v17 = vpop.eup %1583  ;;  %v684_v26 = vxor.u32 2147483648, %v1582_v36  ;;  %v1557_v4 = vld [vmem:[%s2159_s0 + $0x138] sm:$0xff]   ;;  %vm929_vm6 = vcmask 1040384   ;;  %v1566_v42 = vld [vmem:[%s2159_s0 + $0x170] sm:$0xff]  }
 0x14c   :  { %v579_v1 = vsel %vm577_vm8, %v1578_v52, %v578_v60  ;;  %1585 = vcosq.f32 %v776_v20  ;;  %v681_v24 = vxor.u32 2147483648, %v1584_v17  ;;  %1457 = vmatprep.subr.bf16.mxu1 %v1557_v4  ;;  %v917_v52 = vld [vmem:[%s2160_s1 + $0x40] sm:$0xff]  ;;  %v1563_v60 = vld [vmem:[%s2159_s0 + $0x108] sm:$0xff]  }
 0x14d   :  { %v583_v25 = vsel %vm576_vm9, %v579_v1, %v582_v61  ;;  %1587 = vsinq.f32 %v776_v20  ;;  %v685_v23 = vsel %vm683_vm14, %v684_v26, %v1584_v17  ;;  %v920_v15 = vpack.c.bf16 %v918_v58, %v917_v52  ;;  %v1564_v61 = vld [vmem:[%s2159_s0 + $0x100] sm:$0xff]  }
 0x14e   :  { %v584_v5 = vsel %vm574_vm11, nan, %v583_v25  ;;  %v682_v59 = vsel %vm680_vm13, %v1582_v36, %v681_v24  ;;  %v1568_v1 = vld [vmem:[%s2159_s0 + $0x160] sm:$0xff]   ;;  %v1569_v25 = vld [vmem:[%s2159_s0 + $0x158] sm:$0xff]  }
 0x14f   :  { %v791_v62 = vpack.c.bf16 %v584_v5, %v481_v63  ;;  %v686_v33 = vsel %vm679_vm15, %v682_v59, %v685_v23  ;;  %v1567_v63 = vld [vmem:[%s2159_s0 + $0x168] sm:$0xff]   ;;  %v1570_v59 = vld [vmem:[%s2159_s0 + $0x150] sm:$0xff]  }
 0x150   :  { %v687_v7 = vsel %vm677_vm1, nan, %v686_v33  ;;  %v1571_v23 = vld [vmem:[%s2159_s0 + $0x148] sm:$0xff]  }
 0x151   :  { %1447 = vmatprep.mubr.bf16.mxu1 %v791_v62 }
 0x159   :  { %v1586_v31 = vpop.eup %1585 }
 0x15a   :  { %v1588_v32 = vpop.eup %1587  ;;  %v787_v34 = vxor.u32 2147483648, %v1586_v31 }
 0x15b   :  { %v784_v14 = vxor.u32 2147483648, %v1588_v32 }
 0x15c   :  { %v788_v10 = vsel %vm786_vm0, %v787_v34, %v1588_v32  ;;  %v1293_v34 = vld [vmem:[%s2160_s1 + $0x54] ss:$0 sm:$0xff] }
 0x15d   :  { %v785_v53 = vsel %vm783_vm2, %v1586_v31, %v784_v14  ;;  %v1572_v31 = vld [vmem:[%s2159_s0 + $0x140] sm:$0xff]  }
 0x15e   :  { %v789_v49 = vsel %vm782_vm3, %v785_v53, %v788_v10 }
 0x15f   :  { %v790_v57 = vsel %vm780_vm4, nan, %v789_v49 }
 0x160   :  { %v792_v38 = vpack.c.bf16 %v790_v57, %v687_v7 }
 0x162   :  { %1448 = vmatmul.mubr.bf16.vlgmr.msra.gmra.mxu1 %v792_v38 }
 0x163   :  { %1458 = vmatpush3.bf16.msra.mxu1 %v1557_v4 }
 0x164   :  { %1459 = vmatprep.subr.bf16.mxu1 %v1558_v30 }
 0x167   :  { %1460 = vmatpush3.bf16.msra.mxu1 %v1558_v30 }
 0x168   :  { %1461 = vmatprep.subr.bf16.mxu1 %v1559_v37 }
 0x16b   :  { %1462 = vmatpush3.bf16.msra.mxu1 %v1559_v37  ;;  %v1302_v37 = vld [vmem:[%s2160_s1 + $0x55] ss:$0 sm:$0xff] }
 0x16c   :  { %1463 = vmatprep.subr.bf16.mxu1 %v1560_v41 }
 0x16f   :  { %1464 = vmatpush3.bf16.msra.mxu1 %v1560_v41 }
 0x170   :  { %1465 = vmatprep.subr.bf16.mxu1 %v1561_v56 }
 0x173   :  { %1466 = vmatpush3.bf16.msra.mxu1 %v1561_v56 }
 0x174   :  { %1467 = vmatprep.subr.bf16.mxu1 %v1562_v18 }
 0x177   :  { %1468 = vmatpush3.bf16.msra.mxu1 %v1562_v18 }
 0x178   :  { %1469 = vmatprep.subr.bf16.mxu1 %v1563_v60 }
 0x17b   :  { %1470 = vmatpush3.bf16.msra.mxu1 %v1563_v60 }
 0x17c   :  { %1471 = vmatprep.subr.bf16.mxu1 %v1564_v61 }
 0x17f   :  { %1472 = vmatpush3.bf16.msra.mxu1 %v1564_v61 }
 0x1a9   :  { %v228_v11 = vpop.f32.mrf.mxu1 }
 0x1aa   :  { %v229_v16 = vadd.f32 %v1247_v12, %v228_v11 }
 0x1ab   :  { %v1409_v9 = vpop.f32.mrf.mxu1 }
 0x1ac   :  { %v234_v22 = vmax.f32 %v229_v16, 0.0 }
 0x1ad   :  { %v231_v8 = vpop.f32.mrf.mxu1 }
 0x1ae   :  { %v235_v0 = vpack.c.bf16 %v234_v22, %v234_v22 }
 0x1af   :  { %v1410_v28 = vpop.f32.mrf.mxu1 }
 0x1b0   :  { %1428 = vmatmul.mubr.bf16.vlgmr.msra.gmra.mxu0 %v235_v0 }
 0x1b1   :  { %1453 = vmatprep.mubr.msk.bf16.mxu0 %vm922_vm5, %v919_v40 }
 0x222   :  { %v1449_v2 = vpop.f32.mrf.mxu1 }
 0x223   :  { %v905_v11 = vadd.f32 %v1449_v2, %v1282_v54 }
 0x224   :  { %v896_v29 = vpop.f32.mrf.mxu1 }
 0x225   :  { %v897_v27 = vadd.f32 %v1282_v54, %v896_v29  ;;  %v913_v22 = vmax.f32 %v905_v11, 0.0 }
 0x226   :  { %v1450_v5 = vpop.f32.mrf.mxu1 }
 0x227   :  { %v908_v62 = vadd.f32 %v1450_v5, %v1282_v54  ;;  %v911_v19 = vmax.f32 %v897_v27, 0.0 }
 0x228   :  { %v899_v20 = vpop.f32.mrf.mxu1 }
 0x229   :  { %v900_v36 = vadd.f32 %v1282_v54, %v899_v20  ;;  %v914_v17 = vmax.f32 %v908_v62, 0.0 }
 0x22b   :  { %v912_v9 = vmax.f32 %v900_v36, 0.0 }
 0x270   :  { %v339_v45 = vpop.f32.mrf.mxu0 }
 0x271   :  { %v340_v46 = vadd.f32 %v1256_v43, %v339_v45 }
 0x272   :  { %v1429_v48 = vpop.f32.mrf.mxu0 }
 0x273   :  { %v345_v47 = vmax.f32 %v340_v46, 0.0 }
 0x274   :  { %v342_v51 = vpop.f32.mrf.mxu0 }
 0x275   :  { %v921_v21 = vpack.c.bf16 %v345_v47, %v345_v47 }
 0x276   :  { %v1430_v50 = vpop.f32.mrf.mxu0 }
 0x277   :  { %1497 = vmatprep.subr.msk.bf16.mxu0 %vm929_vm6, %v921_v21  ;;  %v931_v55 = vsel %vm929_vm6, %v921_v21, 0 }
 0x278   :  { %1452 = vmatpush3.bf16.msra.mxu0 %v931_v55 }
 0x279   :  { %1477 = vmatprep.subr.bf16.mxu0 %v1565_v13 }
 0x27b   :  { %1454 = vmatmul.mubr.msk.bf16.vlgmr.msra.gmra.mxu0 %vm922_vm5, %v920_v15 }
 0x27c   :  { %1478 = vmatpush3.bf16.msra.mxu0 %v1565_v13 }
 0x27d   :  { %1479 = vmatprep.subr.bf16.mxu0 %v1566_v42 }
 0x280   :  { %1480 = vmatpush3.bf16.msra.mxu0 %v1566_v42 }
 0x281   :  { %1481 = vmatprep.subr.bf16.mxu0 %v1567_v63 }
 0x284   :  { %1482 = vmatpush3.bf16.msra.mxu0 %v1567_v63 }
 0x285   :  { %1483 = vmatprep.subr.bf16.mxu0 %v1568_v1 }
 0x288   :  { %1484 = vmatpush3.bf16.msra.mxu0 %v1568_v1 }
 0x289   :  { %1485 = vmatprep.subr.bf16.mxu0 %v1569_v25 }
 0x28c   :  { %1486 = vmatpush3.bf16.msra.mxu0 %v1569_v25 }
 0x28d   :  { %1487 = vmatprep.subr.bf16.mxu0 %v1570_v59 }
 0x290   :  { %1488 = vmatpush3.bf16.msra.mxu0 %v1570_v59 }
 0x291   :  { %1489 = vmatprep.subr.bf16.mxu0 %v1571_v23 }
 0x294   :  { %1490 = vmatpush3.bf16.msra.mxu0 %v1571_v23 }
 0x295   :  { %1491 = vmatprep.subr.bf16.mxu0 %v1572_v31 }
 0x298   :  { %1492 = vmatpush3.bf16.msra.mxu0 %v1572_v31 }
 0x33b   :  { %v1455_v12 = vpop.f32.mrf.mxu0 }
 0x33c   :  { %v984_v0 = vmul.f32 %v1455_v12, %v913_v22 }
 0x33d   :  { %v967_v35 = vpop.f32.mrf.mxu0 }
 0x33e   :  { %v982_v24 = vmul.f32 %v967_v35, %v911_v19 }
 0x33f   :  { %v1456_v16 = vpop.f32.mrf.mxu0 }
 0x340   :  { %v985_v6 = vmul.f32 %v1456_v16, %v914_v17 }
 0x341   :  { %v970_v8 = vpop.f32.mrf.mxu0 }
 0x342   :  { %v983_v26 = vmul.f32 %v970_v8, %v912_v9  ;;  %v987_v3 = vpack.c.bf16 %v985_v6, %v984_v0 }
 0x344   :  { %v986_v28 = vpack.c.bf16 %v983_v26, %v982_v24 }
 0x346   :  { %1473 = vmatprep.mubr.bf16.mxu1 %v986_v28 }
 0x347   :  { %1474 = vmatmul.mubr.bf16.vlgmr.msra.gmra.mxu1 %v987_v3 }
 0x407   :  { %v1475_v32 = vpop.f32.mrf.mxu1 }
 0x408   :  { %v1100_v53 = vadd.f32 %v1475_v32, %v1293_v34 }
 0x409   :  { %v1091_v33 = vpop.f32.mrf.mxu1 }
 0x40a   :  { %v1092_v10 = vadd.f32 %v1293_v34, %v1091_v33  ;;  %v1108_v40 = vmax.f32 %v1100_v53, 0.0 }
 0x40b   :  { %v1476_v14 = vpop.f32.mrf.mxu1 }
 0x40c   :  { %v1103_v7 = vadd.f32 %v1476_v14, %v1293_v34  ;;  %v1106_v39 = vmax.f32 %v1092_v10, 0.0 }
 0x40d   :  { %v1094_v49 = vpop.f32.mrf.mxu1 }
 0x40e   :  { %v1095_v57 = vadd.f32 %v1293_v34, %v1094_v49  ;;  %v1109_v38 = vmax.f32 %v1103_v7, 0.0 }
 0x410   :  { %v1107_v44 = vmax.f32 %v1095_v57, 0.0  ;;  %v1111_v30 = vpack.c.bf16 %v1109_v38, %v1108_v40 }
 0x412   :  { %v1110_v4 = vpack.c.bf16 %v1107_v44, %v1106_v39 }
 0x414   :  { %1493 = vmatprep.mubr.bf16.mxu0 %v1110_v4 }
 0x415   :  { %1494 = vmatmul.mubr.bf16.vlgmr.msra.gmra.mxu0 %v1111_v30 }
 0x4d5   :  { %v1495_v41 = vpop.f32.mrf.mxu0 }
 0x4d6   :  { %v1224_v56 = vadd.f32 %v1495_v41, %v1302_v37 }
 0x4d7   :  { %v1215_v43 = vpop.f32.mrf.mxu0 }
 0x4d8   :  { %1232 = vst [vmem:[%s2161_s2 + $0x10] sm:$0xff] %v1224_v56  ;;  %v1216_v45 = vadd.f32 %v1302_v37, %v1215_v43 }
 0x4d9   :  { %v1496_v46 = vpop.f32.mrf.mxu0 }
 0x4da   :  { %1230 = vst [vmem:[%s2161_s2] sm:$0xff] %v1216_v45  ;;  %v1227_v48 = vadd.f32 %v1496_v46, %v1302_v37 }
 0x4db   :  { %v1218_v47 = vpop.f32.mrf.mxu0 }
 0x4dc   :  { %1233 = vst [vmem:[%s2161_s2 + $0x18] sm:$0xff] %v1227_v48  ;;  %v1219_v51 = vadd.f32 %v1302_v37, %v1218_v47 }
 0x4de   :  { %1231 = vst [vmem:[%s2161_s2 + $0x8] sm:$0xff] %v1219_v51 }

</bundles_post_ra>
